<compile_context>
chip_gen: v7x
topology: tpu7x:2x2x1
jax: 0.10.0
libtpu: 0.0.40
codegen_flags: <defaults>
</compile_context>

<pallas_src>
import jax
import jax.numpy as jnp
from jax import lax
from jax.experimental import pallas as pl
from jax.experimental.pallas import tpu as pltpu

INPUT_SIZE = 10
HIDDEN_SIZE = 256
OUTPUT_SIZE = 2
MAX_SINGLE_CHUNK = 32   # T <= this -> whole sequence in one grid step
CHUNK = 16              # timesteps per grid step otherwise


def rnn_recurrence_kernel(xproj_ref, h0_ref, wh_ref, hseq_ref, h_scratch):
    """One grid step == one chunk of TS timesteps of the serial recurrence.

    xproj_ref: (TS, B, H) f32   precomputed x_t @ Wx + b_i2h
    h0_ref:    (B, H)     f32   initial hidden (constant block, VMEM-resident)
    wh_ref:    (H, H)     bf16  recurrent weight (constant block, VMEM-resident)
    hseq_ref:  (TS, B, H) f32   per-step hidden states (chunked writeback)
    h_scratch: (B, H)     bf16  carry across chunks
    """
    c = pl.program_id(0)

    @pl.when(c == 0)
    def _():
        h_scratch[...] = h0_ref[...].astype(h_scratch.dtype)

    ts = xproj_ref.shape[0]

    def step(i, h):
        # hidden_t = i2h(cat(x_t, h_{t-1})); dropout(eval) == identity.
        hid = xproj_ref[i] + jnp.dot(h, wh_ref[...],
                                     preferred_element_type=jnp.float32)
        hseq_ref[i] = hid.astype(hseq_ref.dtype)
        return hid.astype(h_scratch.dtype)

    # Short, fixed trip count -> unroll for LLO scheduler visibility.
    h_scratch[...] = lax.fori_loop(0, ts, step, h_scratch[...], unroll=True)


def prepare_params(w_i2h, b_i2h, w_h2o, b_h2o):
    """One-time weight prep (hoisted out of the per-call path).

    torch layout in:  w_i2h (H, I+H), b_i2h (H,), w_h2o (O, H), b_h2o (O,)
    out: wx (I,H) f32, wh (H,H) bf16, bi (1,H) f32, wo (H,O) f32, bo (O,) f32.
    """
    wx = jnp.transpose(w_i2h[:, :INPUT_SIZE]).astype(jnp.float32)
    wh = jnp.transpose(w_i2h[:, INPUT_SIZE:]).astype(jnp.bfloat16)
    bi = b_i2h.reshape(1, HIDDEN_SIZE).astype(jnp.float32)
    wo = jnp.transpose(w_h2o).astype(jnp.float32)
    bo = b_h2o.astype(jnp.float32)
    return wx, wh, bi, wo, bo


@jax.jit
def rnn_sequence(x_seq, h0, wx, wh, bi, wo, bo):
    """Apply the torch module T times: returns (out_seq (T,B,O), h_seq (T,B,H))."""
    T, B, _ = x_seq.shape

    # Non-recurrent input projection: one big parallel matmul, off the serial path.
    xproj = jnp.einsum('tbi,ih->tbh', x_seq.astype(jnp.float32), wx,
                       preferred_element_type=jnp.float32) + bi      # (T,B,H) f32

    # Chunking: small T -> a single grid step; otherwise CHUNK steps per grid step.
    ts = T if T <= MAX_SINGLE_CHUNK else CHUNK
    n_chunks = -(-T // ts)
    t_pad = n_chunks * ts
    if t_pad != T:
        xproj = jnp.pad(xproj, ((0, t_pad - T), (0, 0), (0, 0)))

    h_seq = pl.pallas_call(
        rnn_recurrence_kernel,
        out_shape=jax.ShapeDtypeStruct((t_pad, B, HIDDEN_SIZE), jnp.float32),
        grid_spec=pltpu.PrefetchScalarGridSpec(
            num_scalar_prefetch=0,
            grid=(n_chunks,),
            in_specs=[
                # xproj streamed one chunk at a time.
                pl.BlockSpec((ts, B, HIDDEN_SIZE), lambda c: (c, 0, 0)),
                # h0 and Wh: same block every step -> VMEM-resident for the call.
                pl.BlockSpec((B, HIDDEN_SIZE), lambda c: (0, 0)),
                pl.BlockSpec((HIDDEN_SIZE, HIDDEN_SIZE), lambda c: (0, 0)),
            ],
            out_specs=pl.BlockSpec((ts, B, HIDDEN_SIZE), lambda c: (c, 0, 0)),
            scratch_shapes=[pltpu.VMEM((B, HIDDEN_SIZE), jnp.bfloat16)],
        ),
        compiler_params=pltpu.CompilerParams(
            dimension_semantics=("arbitrary",),   # recurrence is sequential in t
        ),
    )(xproj, h0, wh)

    h_seq = h_seq[:T]
    # h2o head: no recurrence dependency -> one parallel matmul after the kernel.
    out_seq = jnp.einsum('tbh,ho->tbo', h_seq, wo,
                         preferred_element_type=jnp.float32) + bo
    return out_seq, h_seq


def rnn_step(x, h, wx, wh, bi, wo, bo):
    """Single-step forward matching RNN.forward(input, hidden) -> (output, hidden)."""
    out_seq, h_seq = rnn_sequence(x[None], h, wx, wh, bi, wo, bo)
    return out_seq[0], h_seq[0]


def init_params(key):
    """Deterministic init mimicking torch nn.Linear default (uniform +/- 1/sqrt(fan_in))."""
    k1, k2, k3, k4 = jax.random.split(key, 4)
    fan_i2h = INPUT_SIZE + HIDDEN_SIZE
    bound_i2h = 1.0 / jnp.sqrt(jnp.float32(fan_i2h))
    bound_h2o = 1.0 / jnp.sqrt(jnp.float32(HIDDEN_SIZE))
    w_i2h = jax.random.uniform(k1, (HIDDEN_SIZE, fan_i2h), jnp.float32,
                               -bound_i2h, bound_i2h)
    b_i2h = jax.random.uniform(k2, (HIDDEN_SIZE,), jnp.float32,
                               -bound_i2h, bound_i2h)
    w_h2o = jax.random.uniform(k3, (OUTPUT_SIZE, HIDDEN_SIZE), jnp.float32,
                               -bound_h2o, bound_h2o)
    b_h2o = jax.random.uniform(k4, (OUTPUT_SIZE,), jnp.float32,
                               -bound_h2o, bound_h2o)
    return w_i2h, b_i2h, w_h2o, b_h2o


if __name__ == "__main__":
    key = jax.random.PRNGKey(0)
    kp, kx = jax.random.split(key)
    w_i2h, b_i2h, w_h2o, b_h2o = init_params(kp)
    params = prepare_params(w_i2h, b_i2h, w_h2o, b_h2o)   # one-time prep

    B, T = 8, 8
    x_seq = jax.random.normal(kx, (T, B, INPUT_SIZE), jnp.float32)
    h0 = jnp.zeros((B, HIDDEN_SIZE), jnp.float32)          # init_hidden

    out_seq, h_seq = rnn_sequence(x_seq, h0, *params)
    jax.block_until_ready((out_seq, h_seq))

    # Pure-f32 reference with torch semantics:
    #   hidden = cat(x, h) @ W_i2h.T + b_i2h ; dropout(eval)=identity ;
    #   output = hidden @ W_h2o.T + b_h2o.
    # Kernel uses bf16 Wh / bf16 carried h with f32 accumulation -> 1e-2 tolerance.
    h = h0
    ref_outs, ref_hs = [], []
    for t in range(T):
        combined = jnp.concatenate([x_seq[t], h], axis=1)
        h = combined @ w_i2h.T + b_i2h
        ref_outs.append(h @ w_h2o.T + b_h2o)
        ref_hs.append(h)
    ref_out = jnp.stack(ref_outs)
    ref_h = jnp.stack(ref_hs)

    assert jnp.allclose(h_seq, ref_h, atol=1e-2, rtol=1e-2), \
        float(jnp.max(jnp.abs(h_seq - ref_h)))
    assert jnp.allclose(out_seq, ref_out, atol=1e-2, rtol=1e-2), \
        float(jnp.max(jnp.abs(out_seq - ref_out)))

    # Single-step API (exact torch forward signature) also works.
    out0, h1 = rnn_step(x_seq[0], h0, *params)
    jax.block_until_ready((out0, h1))
    assert jnp.allclose(out0, out_seq[0], atol=1e-3, rtol=1e-3)
    assert jnp.allclose(h1, h_seq[0], atol=1e-3, rtol=1e-3)

    print("KERNEL_OK")
</pallas_src>

<mosaic_0001>
module attributes {stable_mosaic.version = 11 : i64} {
  func.func @rnn_recurrence_kernel(%arg0: i32, %arg1: memref<8x8x256xf32, #tpu.memory_space<vmem>>, %arg2: memref<8x256xf32, #tpu.memory_space<vmem>>, %arg3: memref<256x256xbf16, #tpu.memory_space<vmem>>, %arg4: memref<8x8x256xf32, #tpu.memory_space<vmem>>, %arg5: memref<8x256xbf16, #tpu.memory_space<vmem>>) attributes {dimension_semantics = [#tpu.dimension_semantics<arbitrary>], iteration_bounds = array<i64: 1>, scalar_prefetch = 0 : i64, scratch_operands = 1 : i64, tpu.core_type = #tpu.core_type<tc>, window_params = [{transform_indices = @transform_0, window_bounds = array<i64: 8, 8, 256>}, {pipeline_mode = #tpu.pipeline_mode<synchronous>, transform_indices = @transform_1, window_bounds = array<i64: 8, 256>}, {pipeline_mode = #tpu.pipeline_mode<synchronous>, transform_indices = @transform_2, window_bounds = array<i64: 256, 256>}, {transform_indices = @transform_3, window_bounds = array<i64: 8, 8, 256>}]} {
    %c0_i32 = arith.constant 0 : i32
    %0 = arith.cmpi eq, %arg0, %c0_i32 : i32
    %1 = arith.extui %0 : i1 to i32
    %c0_i32_0 = arith.constant 0 : i32
    %2 = arith.cmpi ne, %1, %c0_i32_0 : i32
    scf.if %2 {
      %c0_60 = arith.constant 0 : index
      %c0_61 = arith.constant 0 : index
      %93 = vector.load %arg2[%c0_60, %c0_61] : memref<8x256xf32, #tpu.memory_space<vmem>>, vector<8x256xf32>
      %94 = arith.truncf %93 : vector<8x256xf32> to vector<8x256xbf16>
      %c0_62 = arith.constant 0 : index
      %c0_63 = arith.constant 0 : index
      %95 = vector.load %arg5[%c0_62, %c0_63] : memref<8x256xbf16, #tpu.memory_space<vmem>>, vector<8x256xbf16>
      tpu.vector_store %arg5[%c0_62, %c0_63], %94 {strides = array<i32>} : memref<8x256xbf16, #tpu.memory_space<vmem>>, vector<8x256xbf16>,
    } else {
    }
    %c0 = arith.constant 0 : index
    %c0_1 = arith.constant 0 : index
    %3 = vector.load %arg5[%c0, %c0_1] : memref<8x256xbf16, #tpu.memory_space<vmem>>, vector<8x256xbf16>
    %c0_i32_2 = arith.constant 0 : i32
    %4 = arith.index_cast %c0_i32_2 : i32 to index
    %c0_3 = arith.constant 0 : index
    %c0_4 = arith.constant 0 : index
    %5 = vector.load %arg1[%4, %c0_3, %c0_4] : memref<8x8x256xf32, #tpu.memory_space<vmem>>, vector<1x8x256xf32>
    %6 = vector.shape_cast %5 : vector<1x8x256xf32> to vector<8x256xf32>
    %c0_5 = arith.constant 0 : index
    %c0_6 = arith.constant 0 : index
    %7 = vector.load %arg3[%c0_5, %c0_6] : memref<256x256xbf16, #tpu.memory_space<vmem>>, vector<256x256xbf16>
    %cst = arith.constant dense<0.000000e+00> : vector<8x256xf32>
    %8 = tpu.matmul %3, %7, %cst {dimension_numbers = #tpu.dot_dimension_numbers<[1], [0], [0], [1], [0, 0, 1, 1], [], []>} : vector<8x256xbf16>, vector<256x256xbf16>, vector<8x256xf32> -> vector<8x256xf32>
    %9 = arith.addf %6, %8 : vector<8x256xf32>
    %10 = arith.index_cast %c0_i32_2 : i32 to index
    %c0_7 = arith.constant 0 : index
    %c0_8 = arith.constant 0 : index
    %11 = vector.load %arg4[%10, %c0_7, %c0_8] : memref<8x8x256xf32, #tpu.memory_space<vmem>>, vector<1x8x256xf32>
    %12 = vector.shape_cast %11 : vector<1x8x256xf32> to vector<8x256xf32>
    %13 = vector.shape_cast %9 : vector<8x256xf32> to vector<1x8x256xf32>
    tpu.vector_store %arg4[%10, %c0_7, %c0_8], %13 {strides = array<i32>} : memref<8x8x256xf32, #tpu.memory_space<vmem>>, vector<1x8x256xf32>,
    %14 = arith.truncf %9 : vector<8x256xf32> to vector<8x256xbf16>
    %c1_i32 = arith.constant 1 : i32
    %15 = arith.index_cast %c1_i32 : i32 to index
    %c0_9 = arith.constant 0 : index
    %c0_10 = arith.constant 0 : index
    %16 = vector.load %arg1[%15, %c0_9, %c0_10] : memref<8x8x256xf32, #tpu.memory_space<vmem>>, vector<1x8x256xf32>
    %17 = vector.shape_cast %16 : vector<1x8x256xf32> to vector<8x256xf32>
    %c0_11 = arith.constant 0 : index
    %c0_12 = arith.constant 0 : index
    %18 = vector.load %arg3[%c0_11, %c0_12] : memref<256x256xbf16, #tpu.memory_space<vmem>>, vector<256x256xbf16>
    %cst_13 = arith.constant dense<0.000000e+00> : vector<8x256xf32>
    %19 = tpu.matmul %14, %18, %cst_13 {dimension_numbers = #tpu.dot_dimension_numbers<[1], [0], [0], [1], [0, 0, 1, 1], [], []>} : vector<8x256xbf16>, vector<256x256xbf16>, vector<8x256xf32> -> vector<8x256xf32>
    %20 = arith.addf %17, %19 : vector<8x256xf32>
    %21 = arith.index_cast %c1_i32 : i32 to index
    %c0_14 = arith.constant 0 : index
    %c0_15 = arith.constant 0 : index
    %22 = vector.load %arg4[%21, %c0_14, %c0_15] : memref<8x8x256xf32, #tpu.memory_space<vmem>>, vector<1x8x256xf32>
    %23 = vector.shape_cast %22 : vector<1x8x256xf32> to vector<8x256xf32>
    %24 = vector.shape_cast %20 : vector<8x256xf32> to vector<1x8x256xf32>
    tpu.vector_store %arg4[%21, %c0_14, %c0_15], %24 {strides = array<i32>} : memref<8x8x256xf32, #tpu.memory_space<vmem>>, vector<1x8x256xf32>,
    %25 = arith.truncf %20 : vector<8x256xf32> to vector<8x256xbf16>
    %c2_i32 = arith.constant 2 : i32
    %26 = arith.index_cast %c2_i32 : i32 to index
    %c0_16 = arith.constant 0 : index
    %c0_17 = arith.constant 0 : index
    %27 = vector.load %arg1[%26, %c0_16, %c0_17] : memref<8x8x256xf32, #tpu.memory_space<vmem>>, vector<1x8x256xf32>
    %28 = vector.shape_cast %27 : vector<1x8x256xf32> to vector<8x256xf32>
    %c0_18 = arith.constant 0 : index
    %c0_19 = arith.constant 0 : index
    %29 = vector.load %arg3[%c0_18, %c0_19] : memref<256x256xbf16, #tpu.memory_space<vmem>>, vector<256x256xbf16>
    %cst_20 = arith.constant dense<0.000000e+00> : vector<8x256xf32>
    %30 = tpu.matmul %25, %29, %cst_20 {dimension_numbers = #tpu.dot_dimension_numbers<[1], [0], [0], [1], [0, 0, 1, 1], [], []>} : vector<8x256xbf16>, vector<256x256xbf16>, vector<8x256xf32> -> vector<8x256xf32>
    %31 = arith.addf %28, %30 : vector<8x256xf32>
    %32 = arith.index_cast %c2_i32 : i32 to index
    %c0_21 = arith.constant 0 : index
    %c0_22 = arith.constant 0 : index
    %33 = vector.load %arg4[%32, %c0_21, %c0_22] : memref<8x8x256xf32, #tpu.memory_space<vmem>>, vector<1x8x256xf32>
    %34 = vector.shape_cast %33 : vector<1x8x256xf32> to vector<8x256xf32>
    %35 = vector.shape_cast %31 : vector<8x256xf32> to vector<1x8x256xf32>
    tpu.vector_store %arg4[%32, %c0_21, %c0_22], %35 {strides = array<i32>} : memref<8x8x256xf32, #tpu.memory_space<vmem>>, vector<1x8x256xf32>,
    %36 = arith.truncf %31 : vector<8x256xf32> to vector<8x256xbf16>
    %c3_i32 = arith.constant 3 : i32
    %37 = arith.index_cast %c3_i32 : i32 to index
    %c0_23 = arith.constant 0 : index
    %c0_24 = arith.constant 0 : index
    %38 = vector.load %arg1[%37, %c0_23, %c0_24] : memref<8x8x256xf32, #tpu.memory_space<vmem>>, vector<1x8x256xf32>
    %39 = vector.shape_cast %38 : vector<1x8x256xf32> to vector<8x256xf32>
    %c0_25 = arith.constant 0 : index
    %c0_26 = arith.constant 0 : index
    %40 = vector.load %arg3[%c0_25, %c0_26] : memref<256x256xbf16, #tpu.memory_space<vmem>>, vector<256x256xbf16>
    %cst_27 = arith.constant dense<0.000000e+00> : vector<8x256xf32>
    %41 = tpu.matmul %36, %40, %cst_27 {dimension_numbers = #tpu.dot_dimension_numbers<[1], [0], [0], [1], [0, 0, 1, 1], [], []>} : vector<8x256xbf16>, vector<256x256xbf16>, vector<8x256xf32> -> vector<8x256xf32>
    %42 = arith.addf %39, %41 : vector<8x256xf32>
    %43 = arith.index_cast %c3_i32 : i32 to index
    %c0_28 = arith.constant 0 : index
    %c0_29 = arith.constant 0 : index
    %44 = vector.load %arg4[%43, %c0_28, %c0_29] : memref<8x8x256xf32, #tpu.memory_space<vmem>>, vector<1x8x256xf32>
    %45 = vector.shape_cast %44 : vector<1x8x256xf32> to vector<8x256xf32>
    %46 = vector.shape_cast %42 : vector<8x256xf32> to vector<1x8x256xf32>
    tpu.vector_store %arg4[%43, %c0_28, %c0_29], %46 {strides = array<i32>} : memref<8x8x256xf32, #tpu.memory_space<vmem>>, vector<1x8x256xf32>,
    %47 = arith.truncf %42 : vector<8x256xf32> to vector<8x256xbf16>
    %c4_i32 = arith.constant 4 : i32
    %48 = arith.index_cast %c4_i32 : i32 to index
    %c0_30 = arith.constant 0 : index
    %c0_31 = arith.constant 0 : index
    %49 = vector.load %arg1[%48, %c0_30, %c0_31] : memref<8x8x256xf32, #tpu.memory_space<vmem>>, vector<1x8x256xf32>
    %50 = vector.shape_cast %49 : vector<1x8x256xf32> to vector<8x256xf32>
    %c0_32 = arith.constant 0 : index
    %c0_33 = arith.constant 0 : index
    %51 = vector.load %arg3[%c0_32, %c0_33] : memref<256x256xbf16, #tpu.memory_space<vmem>>, vector<256x256xbf16>
    %cst_34 = arith.constant dense<0.000000e+00> : vector<8x256xf32>
    %52 = tpu.matmul %47, %51, %cst_34 {dimension_numbers = #tpu.dot_dimension_numbers<[1], [0], [0], [1], [0, 0, 1, 1], [], []>} : vector<8x256xbf16>, vector<256x256xbf16>, vector<8x256xf32> -> vector<8x256xf32>
    %53 = arith.addf %50, %52 : vector<8x256xf32>
    %54 = arith.index_cast %c4_i32 : i32 to index
    %c0_35 = arith.constant 0 : index
    %c0_36 = arith.constant 0 : index
    %55 = vector.load %arg4[%54, %c0_35, %c0_36] : memref<8x8x256xf32, #tpu.memory_space<vmem>>, vector<1x8x256xf32>
    %56 = vector.shape_cast %55 : vector<1x8x256xf32> to vector<8x256xf32>
    %57 = vector.shape_cast %53 : vector<8x256xf32> to vector<1x8x256xf32>
    tpu.vector_store %arg4[%54, %c0_35, %c0_36], %57 {strides = array<i32>} : memref<8x8x256xf32, #tpu.memory_space<vmem>>, vector<1x8x256xf32>,
    %58 = arith.truncf %53 : vector<8x256xf32> to vector<8x256xbf16>
    %c5_i32 = arith.constant 5 : i32
    %59 = arith.index_cast %c5_i32 : i32 to index
    %c0_37 = arith.constant 0 : index
    %c0_38 = arith.constant 0 : index
    %60 = vector.load %arg1[%59, %c0_37, %c0_38] : memref<8x8x256xf32, #tpu.memory_space<vmem>>, vector<1x8x256xf32>
    %61 = vector.shape_cast %60 : vector<1x8x256xf32> to vector<8x256xf32>
    %c0_39 = arith.constant 0 : index
    %c0_40 = arith.constant 0 : index
    %62 = vector.load %arg3[%c0_39, %c0_40] : memref<256x256xbf16, #tpu.memory_space<vmem>>, vector<256x256xbf16>
    %cst_41 = arith.constant dense<0.000000e+00> : vector<8x256xf32>
    %63 = tpu.matmul %58, %62, %cst_41 {dimension_numbers = #tpu.dot_dimension_numbers<[1], [0], [0], [1], [0, 0, 1, 1], [], []>} : vector<8x256xbf16>, vector<256x256xbf16>, vector<8x256xf32> -> vector<8x256xf32>
    %64 = arith.addf %61, %63 : vector<8x256xf32>
    %65 = arith.index_cast %c5_i32 : i32 to index
    %c0_42 = arith.constant 0 : index
    %c0_43 = arith.constant 0 : index
    %66 = vector.load %arg4[%65, %c0_42, %c0_43] : memref<8x8x256xf32, #tpu.memory_space<vmem>>, vector<1x8x256xf32>
    %67 = vector.shape_cast %66 : vector<1x8x256xf32> to vector<8x256xf32>
    %68 = vector.shape_cast %64 : vector<8x256xf32> to vector<1x8x256xf32>
    tpu.vector_store %arg4[%65, %c0_42, %c0_43], %68 {strides = array<i32>} : memref<8x8x256xf32, #tpu.memory_space<vmem>>, vector<1x8x256xf32>,
    %69 = arith.truncf %64 : vector<8x256xf32> to vector<8x256xbf16>
    %c6_i32 = arith.constant 6 : i32
    %70 = arith.index_cast %c6_i32 : i32 to index
    %c0_44 = arith.constant 0 : index
    %c0_45 = arith.constant 0 : index
    %71 = vector.load %arg1[%70, %c0_44, %c0_45] : memref<8x8x256xf32, #tpu.memory_space<vmem>>, vector<1x8x256xf32>
    %72 = vector.shape_cast %71 : vector<1x8x256xf32> to vector<8x256xf32>
    %c0_46 = arith.constant 0 : index
    %c0_47 = arith.constant 0 : index
    %73 = vector.load %arg3[%c0_46, %c0_47] : memref<256x256xbf16, #tpu.memory_space<vmem>>, vector<256x256xbf16>
    %cst_48 = arith.constant dense<0.000000e+00> : vector<8x256xf32>
    %74 = tpu.matmul %69, %73, %cst_48 {dimension_numbers = #tpu.dot_dimension_numbers<[1], [0], [0], [1], [0, 0, 1, 1], [], []>} : vector<8x256xbf16>, vector<256x256xbf16>, vector<8x256xf32> -> vector<8x256xf32>
    %75 = arith.addf %72, %74 : vector<8x256xf32>
    %76 = arith.index_cast %c6_i32 : i32 to index
    %c0_49 = arith.constant 0 : index
    %c0_50 = arith.constant 0 : index
    %77 = vector.load %arg4[%76, %c0_49, %c0_50] : memref<8x8x256xf32, #tpu.memory_space<vmem>>, vector<1x8x256xf32>
    %78 = vector.shape_cast %77 : vector<1x8x256xf32> to vector<8x256xf32>
    %79 = vector.shape_cast %75 : vector<8x256xf32> to vector<1x8x256xf32>
    tpu.vector_store %arg4[%76, %c0_49, %c0_50], %79 {strides = array<i32>} : memref<8x8x256xf32, #tpu.memory_space<vmem>>, vector<1x8x256xf32>,
    %80 = arith.truncf %75 : vector<8x256xf32> to vector<8x256xbf16>
    %c7_i32 = arith.constant 7 : i32
    %81 = arith.index_cast %c7_i32 : i32 to index
    %c0_51 = arith.constant 0 : index
    %c0_52 = arith.constant 0 : index
    %82 = vector.load %arg1[%81, %c0_51, %c0_52] : memref<8x8x256xf32, #tpu.memory_space<vmem>>, vector<1x8x256xf32>
    %83 = vector.shape_cast %82 : vector<1x8x256xf32> to vector<8x256xf32>
    %c0_53 = arith.constant 0 : index
    %c0_54 = arith.constant 0 : index
    %84 = vector.load %arg3[%c0_53, %c0_54] : memref<256x256xbf16, #tpu.memory_space<vmem>>, vector<256x256xbf16>
    %cst_55 = arith.constant dense<0.000000e+00> : vector<8x256xf32>
    %85 = tpu.matmul %80, %84, %cst_55 {dimension_numbers = #tpu.dot_dimension_numbers<[1], [0], [0], [1], [0, 0, 1, 1], [], []>} : vector<8x256xbf16>, vector<256x256xbf16>, vector<8x256xf32> -> vector<8x256xf32>
    %86 = arith.addf %83, %85 : vector<8x256xf32>
    %87 = arith.index_cast %c7_i32 : i32 to index
    %c0_56 = arith.constant 0 : index
    %c0_57 = arith.constant 0 : index
    %88 = vector.load %arg4[%87, %c0_56, %c0_57] : memref<8x8x256xf32, #tpu.memory_space<vmem>>, vector<1x8x256xf32>
    %89 = vector.shape_cast %88 : vector<1x8x256xf32> to vector<8x256xf32>
    %90 = vector.shape_cast %86 : vector<8x256xf32> to vector<1x8x256xf32>
    tpu.vector_store %arg4[%87, %c0_56, %c0_57], %90 {strides = array<i32>} : memref<8x8x256xf32, #tpu.memory_space<vmem>>, vector<1x8x256xf32>,
    %91 = arith.truncf %86 : vector<8x256xf32> to vector<8x256xbf16>
    %c8_i32 = arith.constant 8 : i32
    %c0_58 = arith.constant 0 : index
    %c0_59 = arith.constant 0 : index
    %92 = vector.load %arg5[%c0_58, %c0_59] : memref<8x256xbf16, #tpu.memory_space<vmem>>, vector<8x256xbf16>
    tpu.vector_store %arg5[%c0_58, %c0_59], %91 {strides = array<i32>} : memref<8x256xbf16, #tpu.memory_space<vmem>>, vector<8x256xbf16>,
    return
  }
  func.func @transform_0(%arg0: i32) -> (i32, i32, i32) {
    %c0_i32 = arith.constant 0 : i32
    %c0_i32_0 = arith.constant 0 : i32
    %c0_i32_1 = arith.constant 0 : i32
    return %arg0, %c0_i32, %c0_i32_0 : i32, i32, i32
  }
  func.func @transform_1(%arg0: i32) -> (i32, i32) {
    %c0_i32 = arith.constant 0 : i32
    %c0_i32_0 = arith.constant 0 : i32
    %c0_i32_1 = arith.constant 0 : i32
    return %c0_i32, %c0_i32_0 : i32, i32
  }
  func.func @transform_2(%arg0: i32) -> (i32, i32) {
    %c0_i32 = arith.constant 0 : i32
    %c0_i32_0 = arith.constant 0 : i32
    %c0_i32_1 = arith.constant 0 : i32
    return %c0_i32, %c0_i32_0 : i32, i32
  }
  func.func @transform_3(%arg0: i32) -> (i32, i32, i32) {
    %c0_i32 = arith.constant 0 : i32
    %c0_i32_0 = arith.constant 0 : i32
    %c0_i32_1 = arith.constant 0 : i32
    return %arg0, %c0_i32, %c0_i32_0 : i32, i32, i32
  }
}

</mosaic_0001>

<bundles_post_ra>
// kernel: rnn_sequence.1
= control target key start
LH: loop header
LB: loop body
LE: loop exit
PB: predicated region body
PF: predicated region fallthrough
CT: control target
= control target key end

     0   :  { %8 = vsyncpa [#allocation4], 0  ;;  %s2420_s12 = smov [#allocation3]   ;;  %s2931_s0 = inlined_call_operand.vmem [shape: f32[8,8,256], index: 0, kind: input, shape index: {}]   ;;  %s2932_s1 = inlined_call_operand.vmem [shape: f32[8,256], index: 1, kind: input, shape index: {}]   ;;  %s2933_s2 = inlined_call_operand.hbm [shape: bf16[256,256], index: 2, kind: input, shape index: {}]   ;;  %s2934_s3 = inlined_call_operand.vmem [shape: f32[8,8,256], index: 3, kind: output, shape index: {}]  }
   0x1   :  { %s18_s13 = sshll.u32 %s2420_s12, 4  ;;  %s2396_s16 = scalar_lea.hbm %s2933_s2, 4096  ;;  %s19_s13 = int_to_ptr.vmem [resolvable:$true] %s18_s13 }
   0x2   :  { %p2397_p0 = scmp.ne.s32.totalorder %s2933_s2, %s2396_s16  ;;  %p2400_p1 = scmp.lt.u32.totalorder %s2396_s16, %s2933_s2 }
   0x4   :  { %p2402_p2 = pnand %p2400_p1, %p2397_p0 }
   0x6   :  { %2405 = shalt.err (!%p2402_p2)
}
   0x7   :  { %s2406_s21 = scalar_lea.vmem %s19_s13, 4096  ;;  %p2411_p4 = scmp.lt.s32.totalorder %s19_s13, %s19_s13 }
   0x8   :  { %p2407_p3 = scmp.ne.s32.totalorder %s19_s13, %s2406_s21  ;;  %p2412_p5 = scmp.lt.s32.totalorder %s2406_s21, %s2406_s21 }
   0xa   :  { %p2413_p6 = por %p2412_p5, %p2411_p4 }
   0xc   :  { %p2414_p7 = pnand %p2413_p6, %p2407_p3 }
   0xe   :  { %2417 = shalt.err (!%p2414_p7)
}
   0xf   :  { %s2421_s22 = smov 128   ;;  %s2422_s23 = smov 8  }
  0x10   :  { %24 = dma.hbm_to_vmem [thread:$0]  %s2933_s2, 4096, %s19_s13, [#allocation4], %s2421_s22, %s2421_s22, %s2422_s23  }
  0x11   :  { %2418 = dma.done.wait [#allocation4], 4096  }
  0x12   :  { %2419 = vsyncadd [#allocation4], 4294963200  ;;  %v2455_v0 = vld [vmem:[#allocation3 + $0x4] ss:$8 sps:$4 sm:$0xff]   ;;  %v2457_v1 = vld [vmem:[#allocation3] ss:$8 sps:$4 sm:$0xff]  }
  0x13   :  { %245 = vmatprep.subr.bf16.mxu0 %v2455_v0  ;;  %v2460_v2 = vld [vmem:[#allocation3 + $0x14] ss:$8 sps:$4 sm:$0xff]   ;;  %487 = vmatprep.subr.bf16.mxu1 %v2455_v0  ;;  %v2464_v3 = vld [vmem:[#allocation3 + $0x10] ss:$8 sps:$4 sm:$0xff]   ;;  %v2468_v4 = vld [vmem:[#allocation3 + $0x24] ss:$8 sps:$4 sm:$0xff]  }
  0x14   :  { %246 = vmatpush1.bf16.msra.mxu0 %v2457_v1  ;;  %488 = vmatpush1.bf16.msra.mxu1 %v2457_v1  ;;  %v2472_v5 = vld [vmem:[#allocation3 + $0x20] ss:$8 sps:$4 sm:$0xff]   ;;  %v2476_v6 = vld [vmem:[#allocation3 + $0x34] ss:$8 sps:$4 sm:$0xff]   ;;  %v2480_v7 = vld [vmem:[#allocation3 + $0x30] ss:$8 sps:$4 sm:$0xff]  }
  0x15   :  { %247 = vmatprep.subr.bf16.mxu0 %v2460_v2  ;;  %489 = vmatprep.subr.bf16.mxu1 %v2460_v2  ;;  %v2484_v8 = vld [vmem:[#allocation3 + $0x44] ss:$8 sps:$4 sm:$0xff]   ;;  %v2488_v9 = vld [vmem:[#allocation3 + $0x40] ss:$8 sps:$4 sm:$0xff]   ;;  %v2492_v10 = vld [vmem:[#allocation3 + $0x54] ss:$8 sps:$4 sm:$0xff]  }
  0x16   :  { %v2496_v11 = vld [vmem:[#allocation3 + $0x50] ss:$8 sps:$4 sm:$0xff]   ;;  %v2500_v12 = vld [vmem:[#allocation3 + $0x64] ss:$8 sps:$4 sm:$0xff]   ;;  %v2503_v13 = vld [vmem:[#allocation3 + $0x60] ss:$8 sps:$4 sm:$0xff]  }
  0x17   :  { %v33_v14 = vld [vmem:[%s2932_s1 + $0x8] sm:$0xff]  ;;  %v2508_v15 = vld [vmem:[#allocation3 + $0x74] ss:$8 sps:$4 sm:$0xff]   ;;  %v2513_v17 = vld [vmem:[#allocation3 + $0x70] ss:$8 sps:$4 sm:$0xff]  }
  0x18   :  { %248 = vmatpush1.bf16.msra.mxu0 %v2464_v3  ;;  %490 = vmatpush1.bf16.msra.mxu1 %v2464_v3  ;;  %v2296_v16 = vpack.c.bf16 %v33_v14, %v33_v14  ;;  %v2516_v18 = vld [vmem:[#allocation3 + $0x84] ss:$8 sps:$4 sm:$0xff]   ;;  %v2522_v19 = vld [vmem:[#allocation3 + $0x80] ss:$8 sps:$4 sm:$0xff]   ;;  %v2524_v20 = vld [vmem:[#allocation3 + $0x94] ss:$8 sps:$4 sm:$0xff]  }
  0x19   :  { %249 = vmatprep.subr.bf16.mxu0 %v2468_v4  ;;  %491 = vmatprep.subr.bf16.mxu1 %v2468_v4  ;;  %v2531_v21 = vld [vmem:[#allocation3 + $0x90] ss:$8 sps:$4 sm:$0xff]   ;;  %v2535_v22 = vld [vmem:[#allocation3 + $0xa4] ss:$8 sps:$4 sm:$0xff]   ;;  %v2539_v23 = vld [vmem:[#allocation3 + $0xa0] ss:$8 sps:$4 sm:$0xff]  }
  0x1a   :  { %277 = vmatprep.mubr.bf16.mxu0 %v2296_v16  ;;  %v2543_v24 = vld [vmem:[#allocation3 + $0xb4] ss:$8 sps:$4 sm:$0xff]   ;;  %v2547_v25 = vld [vmem:[#allocation3 + $0xb0] ss:$8 sps:$4 sm:$0xff]   ;;  %v2551_v26 = vld [vmem:[#allocation3 + $0xc4] ss:$8 sps:$4 sm:$0xff]  }
  0x1b   :  { %v2555_v27 = vld [vmem:[#allocation3 + $0xc0] ss:$8 sps:$4 sm:$0xff]   ;;  %v2559_v28 = vld [vmem:[#allocation3 + $0xd4] ss:$8 sps:$4 sm:$0xff]   ;;  %v2563_v29 = vld [vmem:[#allocation3 + $0xd0] ss:$8 sps:$4 sm:$0xff]  }
  0x1c   :  { %250 = vmatpush1.bf16.msra.mxu0 %v2472_v5  ;;  %492 = vmatpush1.bf16.msra.mxu1 %v2472_v5  ;;  %v2567_v30 = vld [vmem:[#allocation3 + $0xe4] ss:$8 sps:$4 sm:$0xff]   ;;  %v2571_v31 = vld [vmem:[#allocation3 + $0xe0] ss:$8 sps:$4 sm:$0xff]   ;;  %v2575_v32 = vld [vmem:[#allocation3 + $0xf4] ss:$8 sps:$4 sm:$0xff]  }
  0x1d   :  { %251 = vmatprep.subr.bf16.mxu0 %v2476_v6  ;;  %493 = vmatprep.subr.bf16.mxu1 %v2476_v6  ;;  %v2579_v33 = vld [vmem:[#allocation3 + $0xf0] ss:$8 sps:$4 sm:$0xff]   ;;  %v32_v34 = vld [vmem:[%s2932_s1] sm:$0xff]  ;;  %v45_v37 = vld [vmem:[%s2931_s0 + $0x8] sm:$0xff] }
  0x1e   :  { %v2295_v35 = vpack.c.bf16 %v32_v34, %v32_v34  ;;  %v44_v36 = vld [vmem:[%s2931_s0] sm:$0xff]  ;;  %v2040_v46 = vld [vmem:[%s2931_s0 + $0x10] sm:$0xff]  ;;  %v2041_v47 = vld [vmem:[%s2931_s0 + $0x18] sm:$0xff] }
  0x1f   :  { %v2076_v56 = vld [vmem:[%s2931_s0 + $0x20] sm:$0xff]  ;;  %v2077_v57 = vld [vmem:[%s2931_s0 + $0x28] sm:$0xff]  ;;  %v2763_v16 = vld [vmem:[#allocation3 + $0x74] ss:$8 sps:$4 sm:$0xff]  }
  0x20   :  { %252 = vmatpush1.bf16.msra.mxu0 %v2480_v7  ;;  %494 = vmatpush1.bf16.msra.mxu1 %v2480_v7  ;;  %v2757_v14 = vld [vmem:[#allocation3 + $0x64] ss:$8 sps:$4 sm:$0xff]  }
  0x21   :  { %253 = vmatprep.subr.bf16.mxu0 %v2484_v8  ;;  %495 = vmatprep.subr.bf16.mxu1 %v2484_v8 }
  0x24   :  { %254 = vmatpush1.bf16.msra.mxu0 %v2488_v9  ;;  %496 = vmatpush1.bf16.msra.mxu1 %v2488_v9 }
  0x25   :  { %255 = vmatprep.subr.bf16.mxu0 %v2492_v10  ;;  %497 = vmatprep.subr.bf16.mxu1 %v2492_v10 }
  0x28   :  { %256 = vmatpush1.bf16.msra.mxu0 %v2496_v11  ;;  %498 = vmatpush1.bf16.msra.mxu1 %v2496_v11 }
  0x29   :  { %257 = vmatprep.subr.bf16.mxu0 %v2500_v12  ;;  %499 = vmatprep.subr.bf16.mxu1 %v2500_v12 }
  0x2c   :  { %258 = vmatpush1.bf16.msra.mxu0 %v2503_v13  ;;  %500 = vmatpush1.bf16.msra.mxu1 %v2503_v13 }
  0x2d   :  { %259 = vmatprep.subr.bf16.mxu0 %v2508_v15  ;;  %501 = vmatprep.subr.bf16.mxu1 %v2508_v15 }
  0x30   :  { %260 = vmatpush1.bf16.msra.mxu0 %v2513_v17  ;;  %502 = vmatpush1.bf16.msra.mxu1 %v2513_v17 }
  0x31   :  { %261 = vmatprep.subr.bf16.mxu0 %v2516_v18  ;;  %503 = vmatprep.subr.bf16.mxu1 %v2516_v18 }
  0x34   :  { %262 = vmatpush1.bf16.msra.mxu0 %v2522_v19  ;;  %504 = vmatpush1.bf16.msra.mxu1 %v2522_v19 }
  0x35   :  { %263 = vmatprep.subr.bf16.mxu0 %v2524_v20  ;;  %505 = vmatprep.subr.bf16.mxu1 %v2524_v20 }
  0x38   :  { %264 = vmatpush1.bf16.msra.mxu0 %v2531_v21  ;;  %506 = vmatpush1.bf16.msra.mxu1 %v2531_v21 }
  0x39   :  { %265 = vmatprep.subr.bf16.mxu0 %v2535_v22  ;;  %507 = vmatprep.subr.bf16.mxu1 %v2535_v22 }
  0x3c   :  { %266 = vmatpush1.bf16.msra.mxu0 %v2539_v23  ;;  %508 = vmatpush1.bf16.msra.mxu1 %v2539_v23 }
  0x3d   :  { %267 = vmatprep.subr.bf16.mxu0 %v2543_v24  ;;  %509 = vmatprep.subr.bf16.mxu1 %v2543_v24 }
  0x40   :  { %268 = vmatpush1.bf16.msra.mxu0 %v2547_v25  ;;  %510 = vmatpush1.bf16.msra.mxu1 %v2547_v25 }
  0x41   :  { %269 = vmatprep.subr.bf16.mxu0 %v2551_v26  ;;  %511 = vmatprep.subr.bf16.mxu1 %v2551_v26 }
  0x44   :  { %270 = vmatpush1.bf16.msra.mxu0 %v2555_v27  ;;  %512 = vmatpush1.bf16.msra.mxu1 %v2555_v27 }
  0x45   :  { %271 = vmatprep.subr.bf16.mxu0 %v2559_v28  ;;  %513 = vmatprep.subr.bf16.mxu1 %v2559_v28 }
  0x48   :  { %272 = vmatpush1.bf16.msra.mxu0 %v2563_v29  ;;  %514 = vmatpush1.bf16.msra.mxu1 %v2563_v29 }
  0x49   :  { %273 = vmatprep.subr.bf16.mxu0 %v2567_v30  ;;  %515 = vmatprep.subr.bf16.mxu1 %v2567_v30 }
  0x4c   :  { %274 = vmatpush1.bf16.msra.mxu0 %v2571_v31  ;;  %516 = vmatpush1.bf16.msra.mxu1 %v2571_v31 }
  0x4d   :  { %275 = vmatprep.subr.bf16.mxu0 %v2575_v32  ;;  %517 = vmatprep.subr.bf16.mxu1 %v2575_v32 }
  0x50   :  { %276 = vmatpush1.bf16.msra.mxu0 %v2579_v33  ;;  %518 = vmatpush1.bf16.msra.mxu1 %v2579_v33 }
  0x51   :  { %730 = vmatprep.subr.bf16.mxu0 %v2455_v0  ;;  %973 = vmatprep.subr.bf16.mxu1 %v2455_v0 }
  0x53   :  { %278 = vmatmul.mubr.bf16.vlgmr.msra.gmra.mrb[0].mxu0 %v2295_v35 }
  0x54   :  { %731 = vmatpush1.bf16.msra.mxu0 %v2457_v1 }
  0x55   :  { %732 = vmatprep.subr.bf16.mxu0 %v2460_v2 }
  0x58   :  { %733 = vmatpush1.bf16.msra.mxu0 %v2464_v3 }
  0x59   :  { %734 = vmatprep.subr.bf16.mxu0 %v2468_v4 }
  0x5c   :  { %735 = vmatpush1.bf16.msra.mxu0 %v2472_v5 }
  0x5d   :  { %736 = vmatprep.subr.bf16.mxu0 %v2476_v6 }
  0x60   :  { %737 = vmatpush1.bf16.msra.mxu0 %v2480_v7 }
  0x61   :  { %738 = vmatprep.subr.bf16.mxu0 %v2484_v8 }
  0x64   :  { %739 = vmatpush1.bf16.msra.mxu0 %v2488_v9 }
  0x65   :  { %740 = vmatprep.subr.bf16.mxu0 %v2492_v10 }
  0x68   :  { %741 = vmatpush1.bf16.msra.mxu0 %v2496_v11 }
  0x69   :  { %742 = vmatprep.subr.bf16.mxu0 %v2500_v12 }
  0x6c   :  { %743 = vmatpush1.bf16.msra.mxu0 %v2503_v13 }
  0x6d   :  { %744 = vmatprep.subr.bf16.mxu0 %v2508_v15 }
  0x70   :  { %745 = vmatpush1.bf16.msra.mxu0 %v2513_v17 }
  0x71   :  { %746 = vmatprep.subr.bf16.mxu0 %v2516_v18 }
  0x74   :  { %747 = vmatpush1.bf16.msra.mxu0 %v2522_v19 }
  0x75   :  { %748 = vmatprep.subr.bf16.mxu0 %v2524_v20 }
  0x78   :  { %749 = vmatpush1.bf16.msra.mxu0 %v2531_v21 }
  0x79   :  { %750 = vmatprep.subr.bf16.mxu0 %v2535_v22 }
  0x7c   :  { %751 = vmatpush1.bf16.msra.mxu0 %v2539_v23 }
  0x7d   :  { %752 = vmatprep.subr.bf16.mxu0 %v2543_v24 }
  0x80   :  { %753 = vmatpush1.bf16.msra.mxu0 %v2547_v25 }
  0x81   :  { %754 = vmatprep.subr.bf16.mxu0 %v2551_v26 }
  0x84   :  { %755 = vmatpush1.bf16.msra.mxu0 %v2555_v27 }
  0x85   :  { %756 = vmatprep.subr.bf16.mxu0 %v2559_v28 }
  0x88   :  { %757 = vmatpush1.bf16.msra.mxu0 %v2563_v29 }
  0x89   :  { %758 = vmatprep.subr.bf16.mxu0 %v2567_v30 }
  0x8c   :  { %759 = vmatpush1.bf16.msra.mxu0 %v2571_v31 }
  0x8d   :  { %760 = vmatprep.subr.bf16.mxu0 %v2575_v32 }
  0x90   :  { %761 = vmatpush1.bf16.msra.mxu0 %v2579_v33 }
  0x91   :  { %1216 = vmatprep.subr.bf16.mxu0 %v2455_v0 }
 0x126   :  { %v279_v38 = vpop.f32.mrb[0].mxu0 }
 0x127   :  { %v286_v39 = vadd.f32 %v279_v38, %v44_v36  ;;  %v281_v40 = vpop.f32.mrb[1].mxu0 }
 0x128   :  { %v287_v41 = vadd.f32 %v281_v40, %v45_v37  ;;  %v283_v42 = vpop.f32.mrb[2].mxu0 }
 0x129   :  { %288 = vst [vmem:[%s2934_s3] sm:$0xff] %v286_v39  ;;  %v284_v43 = vpop.f32.mrb[3].mxu0  ;;  %v290_v45 = vpack.c.bf16 %v286_v39, %v286_v39  ;;  %v2395_v42 = vld [vmem:[#allocation3 + $0xf4] ss:$8 sps:$4 sm:$0xff]  }
 0x12a   :  { %289 = vst [vmem:[%s2934_s3 + $0x8] sm:$0xff] %v287_v41  ;;  %v291_v44 = vpack.c.bf16 %v287_v41, %v287_v41  ;;  %v2393_v43 = vld [vmem:[#allocation3 + $0xf0] ss:$8 sps:$4 sm:$0xff]  }
 0x12c   :  { %519 = vmatprep.mubr.bf16.mxu1 %v291_v44  ;;  %v2148_v44 = vld [vmem:[%s2931_s0 + $0x40] sm:$0xff] }
 0x12d   :  { %520 = vmatmul.mubr.bf16.vlgmr.msra.gmra.mrb[0].mxu1 %v290_v45  ;;  %v2149_v45 = vld [vmem:[%s2931_s0 + $0x48] sm:$0xff] }
 0x12e   :  { %974 = vmatpush1.bf16.msra.mxu1 %v2457_v1 }
 0x12f   :  { %975 = vmatprep.subr.bf16.mxu1 %v2460_v2 }
 0x132   :  { %976 = vmatpush1.bf16.msra.mxu1 %v2464_v3 }
 0x133   :  { %977 = vmatprep.subr.bf16.mxu1 %v2468_v4 }
 0x136   :  { %978 = vmatpush1.bf16.msra.mxu1 %v2472_v5 }
 0x137   :  { %979 = vmatprep.subr.bf16.mxu1 %v2476_v6 }
 0x13a   :  { %980 = vmatpush1.bf16.msra.mxu1 %v2480_v7 }
 0x13b   :  { %981 = vmatprep.subr.bf16.mxu1 %v2484_v8 }
 0x13e   :  { %982 = vmatpush1.bf16.msra.mxu1 %v2488_v9 }
 0x13f   :  { %983 = vmatprep.subr.bf16.mxu1 %v2492_v10 }
 0x142   :  { %984 = vmatpush1.bf16.msra.mxu1 %v2496_v11 }
 0x143   :  { %985 = vmatprep.subr.bf16.mxu1 %v2500_v12 }
 0x146   :  { %986 = vmatpush1.bf16.msra.mxu1 %v2503_v13 }
 0x147   :  { %987 = vmatprep.subr.bf16.mxu1 %v2508_v15 }
 0x14a   :  { %988 = vmatpush1.bf16.msra.mxu1 %v2513_v17 }
 0x14b   :  { %989 = vmatprep.subr.bf16.mxu1 %v2516_v18 }
 0x14e   :  { %990 = vmatpush1.bf16.msra.mxu1 %v2522_v19 }
 0x14f   :  { %991 = vmatprep.subr.bf16.mxu1 %v2524_v20 }
 0x152   :  { %992 = vmatpush1.bf16.msra.mxu1 %v2531_v21 }
 0x153   :  { %993 = vmatprep.subr.bf16.mxu1 %v2535_v22 }
 0x156   :  { %994 = vmatpush1.bf16.msra.mxu1 %v2539_v23 }
 0x157   :  { %995 = vmatprep.subr.bf16.mxu1 %v2543_v24 }
 0x15a   :  { %996 = vmatpush1.bf16.msra.mxu1 %v2547_v25 }
 0x15b   :  { %997 = vmatprep.subr.bf16.mxu1 %v2551_v26 }
 0x15e   :  { %998 = vmatpush1.bf16.msra.mxu1 %v2555_v27 }
 0x15f   :  { %999 = vmatprep.subr.bf16.mxu1 %v2559_v28 }
 0x162   :  { %1000 = vmatpush1.bf16.msra.mxu1 %v2563_v29 }
 0x163   :  { %1001 = vmatprep.subr.bf16.mxu1 %v2567_v30 }
 0x166   :  { %1002 = vmatpush1.bf16.msra.mxu1 %v2571_v31 }
 0x167   :  { %1003 = vmatprep.subr.bf16.mxu1 %v2575_v32 }
 0x16a   :  { %1004 = vmatpush1.bf16.msra.mxu1 %v2579_v33 }
 0x200   :  { %v521_v48 = vpop.f32.mrb[0].mxu1 }
 0x201   :  { %v528_v49 = vadd.f32 %v2040_v46, %v521_v48  ;;  %v523_v50 = vpop.f32.mrb[1].mxu1 }
 0x202   :  { %v529_v51 = vadd.f32 %v2041_v47, %v523_v50  ;;  %v525_v52 = vpop.f32.mrb[2].mxu1 }
 0x203   :  { %2074 = vst [vmem:[%s2934_s3 + $0x10] sm:$0xff] %v528_v49  ;;  %v526_v53 = vpop.f32.mrb[3].mxu1  ;;  %v533_v55 = vpack.c.bf16 %v528_v49, %v528_v49 }
 0x204   :  { %2075 = vst [vmem:[%s2934_s3 + $0x18] sm:$0xff] %v529_v51  ;;  %v534_v54 = vpack.c.bf16 %v529_v51, %v529_v51 }
 0x206   :  { %762 = vmatprep.mubr.bf16.mxu0 %v534_v54  ;;  %v2184_v54 = vld [vmem:[%s2931_s0 + $0x50] sm:$0xff] }
 0x207   :  { %763 = vmatmul.mubr.bf16.vlgmr.msra.gmra.mrb[4].mxu0 %v533_v55  ;;  %v2185_v55 = vld [vmem:[%s2931_s0 + $0x58] sm:$0xff] }
 0x208   :  { %1217 = vmatpush1.bf16.msra.mxu0 %v2457_v1 }
 0x209   :  { %1218 = vmatprep.subr.bf16.mxu0 %v2460_v2  ;;  %v2721_v2 = vld [vmem:[#allocation3] ss:$8 sps:$4 sm:$0xff]  }
 0x20c   :  { %1219 = vmatpush1.bf16.msra.mxu0 %v2464_v3  ;;  %v2723_v3 = vld [vmem:[#allocation3 + $0x4] ss:$8 sps:$4 sm:$0xff]  }
 0x20d   :  { %1220 = vmatprep.subr.bf16.mxu0 %v2468_v4  ;;  %v2725_v4 = vld [vmem:[#allocation3 + $0x14] ss:$8 sps:$4 sm:$0xff]   ;;  %1459 = vmatprep.subr.bf16.mxu1 %v2723_v3 }
 0x210   :  { %1221 = vmatpush1.bf16.msra.mxu0 %v2472_v5  ;;  %v2730_v5 = vld [vmem:[#allocation3 + $0x10] ss:$8 sps:$4 sm:$0xff]  }
 0x211   :  { %1222 = vmatprep.subr.bf16.mxu0 %v2476_v6  ;;  %v2733_v6 = vld [vmem:[#allocation3 + $0x24] ss:$8 sps:$4 sm:$0xff]  }
 0x214   :  { %1223 = vmatpush1.bf16.msra.mxu0 %v2480_v7  ;;  %v2736_v7 = vld [vmem:[#allocation3 + $0x20] ss:$8 sps:$4 sm:$0xff]  }
 0x215   :  { %1224 = vmatprep.subr.bf16.mxu0 %v2484_v8  ;;  %v2739_v8 = vld [vmem:[#allocation3 + $0x34] ss:$8 sps:$4 sm:$0xff]  }
 0x218   :  { %1225 = vmatpush1.bf16.msra.mxu0 %v2488_v9  ;;  %v2742_v9 = vld [vmem:[#allocation3 + $0x30] ss:$8 sps:$4 sm:$0xff]  }
 0x219   :  { %1226 = vmatprep.subr.bf16.mxu0 %v2492_v10  ;;  %v2745_v10 = vld [vmem:[#allocation3 + $0x44] ss:$8 sps:$4 sm:$0xff]  }
 0x21c   :  { %1227 = vmatpush1.bf16.msra.mxu0 %v2496_v11  ;;  %v2748_v11 = vld [vmem:[#allocation3 + $0x40] ss:$8 sps:$4 sm:$0xff]  }
 0x21d   :  { %1228 = vmatprep.subr.bf16.mxu0 %v2500_v12  ;;  %v2751_v12 = vld [vmem:[#allocation3 + $0x54] ss:$8 sps:$4 sm:$0xff]  }
 0x220   :  { %1229 = vmatpush1.bf16.msra.mxu0 %v2503_v13  ;;  %v2754_v13 = vld [vmem:[#allocation3 + $0x50] ss:$8 sps:$4 sm:$0xff]  }
 0x221   :  { %1230 = vmatprep.subr.bf16.mxu0 %v2508_v15  ;;  %v2760_v15 = vld [vmem:[#allocation3 + $0x60] ss:$8 sps:$4 sm:$0xff]  }
 0x224   :  { %1231 = vmatpush1.bf16.msra.mxu0 %v2513_v17  ;;  %v2766_v17 = vld [vmem:[#allocation3 + $0x70] ss:$8 sps:$4 sm:$0xff]  }
 0x225   :  { %1232 = vmatprep.subr.bf16.mxu0 %v2516_v18  ;;  %v2769_v18 = vld [vmem:[#allocation3 + $0x84] ss:$8 sps:$4 sm:$0xff]  }
 0x228   :  { %1233 = vmatpush1.bf16.msra.mxu0 %v2522_v19  ;;  %v2772_v19 = vld [vmem:[#allocation3 + $0x80] ss:$8 sps:$4 sm:$0xff]  }
 0x229   :  { %1234 = vmatprep.subr.bf16.mxu0 %v2524_v20  ;;  %v2775_v20 = vld [vmem:[#allocation3 + $0x94] ss:$8 sps:$4 sm:$0xff]  }
 0x22c   :  { %1235 = vmatpush1.bf16.msra.mxu0 %v2531_v21  ;;  %v2778_v21 = vld [vmem:[#allocation3 + $0x90] ss:$8 sps:$4 sm:$0xff]  }
 0x22d   :  { %1236 = vmatprep.subr.bf16.mxu0 %v2535_v22  ;;  %v2781_v22 = vld [vmem:[#allocation3 + $0xa4] ss:$8 sps:$4 sm:$0xff]  }
 0x230   :  { %1237 = vmatpush1.bf16.msra.mxu0 %v2539_v23  ;;  %v2784_v23 = vld [vmem:[#allocation3 + $0xa0] ss:$8 sps:$4 sm:$0xff]  }
 0x231   :  { %1238 = vmatprep.subr.bf16.mxu0 %v2543_v24  ;;  %v2787_v24 = vld [vmem:[#allocation3 + $0xb4] ss:$8 sps:$4 sm:$0xff]  }
 0x234   :  { %1239 = vmatpush1.bf16.msra.mxu0 %v2547_v25  ;;  %v2790_v25 = vld [vmem:[#allocation3 + $0xb0] ss:$8 sps:$4 sm:$0xff]  }
 0x235   :  { %1240 = vmatprep.subr.bf16.mxu0 %v2551_v26  ;;  %v2793_v26 = vld [vmem:[#allocation3 + $0xc4] ss:$8 sps:$4 sm:$0xff]  }
 0x238   :  { %1241 = vmatpush1.bf16.msra.mxu0 %v2555_v27  ;;  %v2796_v27 = vld [vmem:[#allocation3 + $0xc0] ss:$8 sps:$4 sm:$0xff]  }
 0x239   :  { %1242 = vmatprep.subr.bf16.mxu0 %v2559_v28  ;;  %v2799_v28 = vld [vmem:[#allocation3 + $0xd4] ss:$8 sps:$4 sm:$0xff]  }
 0x23c   :  { %1243 = vmatpush1.bf16.msra.mxu0 %v2563_v29  ;;  %v2802_v29 = vld [vmem:[#allocation3 + $0xd0] ss:$8 sps:$4 sm:$0xff]  }
 0x23d   :  { %1244 = vmatprep.subr.bf16.mxu0 %v2567_v30  ;;  %v2805_v30 = vld [vmem:[#allocation3 + $0xe4] ss:$8 sps:$4 sm:$0xff]  }
 0x240   :  { %1245 = vmatpush1.bf16.msra.mxu0 %v2571_v31  ;;  %v2808_v31 = vld [vmem:[#allocation3 + $0xe0] ss:$8 sps:$4 sm:$0xff]  }
 0x241   :  { %1246 = vmatprep.subr.bf16.mxu0 %v2575_v32  ;;  %v2112_v32 = vld [vmem:[%s2931_s0 + $0x30] sm:$0xff] }
 0x244   :  { %1247 = vmatpush1.bf16.msra.mxu0 %v2579_v33  ;;  %v2113_v33 = vld [vmem:[%s2931_s0 + $0x38] sm:$0xff] }
 0x245   :  { %1702 = vmatprep.subr.bf16.mxu0 %v2723_v3 }
 0x2da   :  { %v764_v58 = vpop.f32.mrb[4].mxu0 }
 0x2db   :  { %v771_v59 = vadd.f32 %v2076_v56, %v764_v58  ;;  %v766_v60 = vpop.f32.mrb[5].mxu0 }
 0x2dc   :  { %v772_v61 = vadd.f32 %v2077_v57, %v766_v60  ;;  %v768_v62 = vpop.f32.mrb[6].mxu0 }
 0x2dd   :  { %2110 = vst [vmem:[%s2934_s3 + $0x20] sm:$0xff] %v771_v59  ;;  %v769_v63 = vpop.f32.mrb[7].mxu0  ;;  %v776_v1 = vpack.c.bf16 %v771_v59, %v771_v59 }
 0x2de   :  { %2111 = vst [vmem:[%s2934_s3 + $0x28] sm:$0xff] %v772_v61  ;;  %v777_v0 = vpack.c.bf16 %v772_v61, %v772_v61 }
 0x2e0   :  { %1005 = vmatprep.mubr.bf16.mxu1 %v777_v0  ;;  %v2220_v0 = vld [vmem:[%s2931_s0 + $0x60] sm:$0xff] }
 0x2e1   :  { %1006 = vmatmul.mubr.bf16.vlgmr.msra.gmra.mrb[4].mxu1 %v776_v1  ;;  %v2221_v1 = vld [vmem:[%s2931_s0 + $0x68] sm:$0xff] }
 0x2e2   :  { %1460 = vmatpush1.bf16.msra.mxu1 %v2721_v2 }
 0x2e3   :  { %1461 = vmatprep.subr.bf16.mxu1 %v2725_v4 }
 0x2e6   :  { %1462 = vmatpush1.bf16.msra.mxu1 %v2730_v5 }
 0x2e7   :  { %1463 = vmatprep.subr.bf16.mxu1 %v2733_v6 }
 0x2ea   :  { %1464 = vmatpush1.bf16.msra.mxu1 %v2736_v7 }
 0x2eb   :  { %1465 = vmatprep.subr.bf16.mxu1 %v2739_v8 }
 0x2ee   :  { %1466 = vmatpush1.bf16.msra.mxu1 %v2742_v9 }
 0x2ef   :  { %1467 = vmatprep.subr.bf16.mxu1 %v2745_v10 }
 0x2f2   :  { %1468 = vmatpush1.bf16.msra.mxu1 %v2748_v11 }
 0x2f3   :  { %1469 = vmatprep.subr.bf16.mxu1 %v2751_v12 }
 0x2f6   :  { %1470 = vmatpush1.bf16.msra.mxu1 %v2754_v13 }
 0x2f7   :  { %1471 = vmatprep.subr.bf16.mxu1 %v2757_v14 }
 0x2fa   :  { %1472 = vmatpush1.bf16.msra.mxu1 %v2760_v15 }
 0x2fb   :  { %1473 = vmatprep.subr.bf16.mxu1 %v2763_v16 }
 0x2fe   :  { %1474 = vmatpush1.bf16.msra.mxu1 %v2766_v17 }
 0x2ff   :  { %1475 = vmatprep.subr.bf16.mxu1 %v2769_v18 }
 0x302   :  { %1476 = vmatpush1.bf16.msra.mxu1 %v2772_v19 }
 0x303   :  { %1477 = vmatprep.subr.bf16.mxu1 %v2775_v20 }
 0x306   :  { %1478 = vmatpush1.bf16.msra.mxu1 %v2778_v21 }
 0x307   :  { %1479 = vmatprep.subr.bf16.mxu1 %v2781_v22 }
 0x30a   :  { %1480 = vmatpush1.bf16.msra.mxu1 %v2784_v23 }
 0x30b   :  { %1481 = vmatprep.subr.bf16.mxu1 %v2787_v24 }
 0x30e   :  { %1482 = vmatpush1.bf16.msra.mxu1 %v2790_v25 }
 0x30f   :  { %1483 = vmatprep.subr.bf16.mxu1 %v2793_v26 }
 0x312   :  { %1484 = vmatpush1.bf16.msra.mxu1 %v2796_v27 }
 0x313   :  { %1485 = vmatprep.subr.bf16.mxu1 %v2799_v28 }
 0x316   :  { %1486 = vmatpush1.bf16.msra.mxu1 %v2802_v29 }
 0x317   :  { %1487 = vmatprep.subr.bf16.mxu1 %v2805_v30 }
 0x31a   :  { %1488 = vmatpush1.bf16.msra.mxu1 %v2808_v31 }
 0x31b   :  { %1489 = vmatprep.subr.bf16.mxu1 %v2395_v42 }
 0x31e   :  { %1490 = vmatpush1.bf16.msra.mxu1 %v2393_v43 }
 0x31f   :  { %1945 = vmatprep.subr.bf16.mxu1 %v2723_v3 }
 0x3b4   :  { %v1007_v34 = vpop.f32.mrb[4].mxu1 }
 0x3b5   :  { %v1014_v35 = vadd.f32 %v2112_v32, %v1007_v34  ;;  %v1009_v36 = vpop.f32.mrb[5].mxu1 }
 0x3b6   :  { %v1015_v37 = vadd.f32 %v2113_v33, %v1009_v36  ;;  %v1011_v38 = vpop.f32.mrb[6].mxu1 }
 0x3b7   :  { %2146 = vst [vmem:[%s2934_s3 + $0x30] sm:$0xff] %v1014_v35  ;;  %v1012_v39 = vpop.f32.mrb[7].mxu1  ;;  %v1019_v41 = vpack.c.bf16 %v1014_v35, %v1014_v35 }
 0x3b8   :  { %2147 = vst [vmem:[%s2934_s3 + $0x38] sm:$0xff] %v1015_v37  ;;  %v1020_v40 = vpack.c.bf16 %v1015_v37, %v1015_v37 }
 0x3ba   :  { %1248 = vmatprep.mubr.bf16.mxu0 %v1020_v40 }
 0x3bb   :  { %1249 = vmatmul.mubr.bf16.vlgmr.msra.gmra.mrb[8].mxu0 %v1019_v41 }
 0x3bc   :  { %1703 = vmatpush1.bf16.msra.mxu0 %v2721_v2 }
 0x3bd   :  { %1704 = vmatprep.subr.bf16.mxu0 %v2725_v4 }
 0x3c0   :  { %1705 = vmatpush1.bf16.msra.mxu0 %v2730_v5 }
 0x3c1   :  { %1706 = vmatprep.subr.bf16.mxu0 %v2733_v6 }
 0x3c4   :  { %1707 = vmatpush1.bf16.msra.mxu0 %v2736_v7 }
 0x3c5   :  { %1708 = vmatprep.subr.bf16.mxu0 %v2739_v8 }
 0x3c8   :  { %1709 = vmatpush1.bf16.msra.mxu0 %v2742_v9 }
 0x3c9   :  { %1710 = vmatprep.subr.bf16.mxu0 %v2745_v10 }
 0x3cc   :  { %1711 = vmatpush1.bf16.msra.mxu0 %v2748_v11 }
 0x3cd   :  { %1712 = vmatprep.subr.bf16.mxu0 %v2751_v12 }
 0x3d0   :  { %1713 = vmatpush1.bf16.msra.mxu0 %v2754_v13 }
 0x3d1   :  { %1714 = vmatprep.subr.bf16.mxu0 %v2757_v14 }
 0x3d4   :  { %1715 = vmatpush1.bf16.msra.mxu0 %v2760_v15 }
 0x3d5   :  { %1716 = vmatprep.subr.bf16.mxu0 %v2763_v16 }
 0x3d8   :  { %1717 = vmatpush1.bf16.msra.mxu0 %v2766_v17 }
 0x3d9   :  { %1718 = vmatprep.subr.bf16.mxu0 %v2769_v18 }
 0x3dc   :  { %1719 = vmatpush1.bf16.msra.mxu0 %v2772_v19 }
 0x3dd   :  { %1720 = vmatprep.subr.bf16.mxu0 %v2775_v20 }
 0x3e0   :  { %1721 = vmatpush1.bf16.msra.mxu0 %v2778_v21 }
 0x3e1   :  { %1722 = vmatprep.subr.bf16.mxu0 %v2781_v22 }
 0x3e4   :  { %1723 = vmatpush1.bf16.msra.mxu0 %v2784_v23 }
 0x3e5   :  { %1724 = vmatprep.subr.bf16.mxu0 %v2787_v24 }
 0x3e8   :  { %1725 = vmatpush1.bf16.msra.mxu0 %v2790_v25 }
 0x3e9   :  { %1726 = vmatprep.subr.bf16.mxu0 %v2793_v26 }
 0x3ec   :  { %1727 = vmatpush1.bf16.msra.mxu0 %v2796_v27 }
 0x3ed   :  { %1728 = vmatprep.subr.bf16.mxu0 %v2799_v28 }
 0x3f0   :  { %1729 = vmatpush1.bf16.msra.mxu0 %v2802_v29 }
 0x3f1   :  { %1730 = vmatprep.subr.bf16.mxu0 %v2805_v30 }
 0x3f4   :  { %1731 = vmatpush1.bf16.msra.mxu0 %v2808_v31 }
 0x3f5   :  { %1732 = vmatprep.subr.bf16.mxu0 %v2395_v42 }
 0x3f8   :  { %1733 = vmatpush1.bf16.msra.mxu0 %v2393_v43 }
 0x48e   :  { %v1250_v46 = vpop.f32.mrb[8].mxu0 }
 0x48f   :  { %v1257_v47 = vadd.f32 %v2148_v44, %v1250_v46  ;;  %v1252_v48 = vpop.f32.mrb[9].mxu0 }
 0x490   :  { %v1258_v49 = vadd.f32 %v2149_v45, %v1252_v48  ;;  %v1254_v50 = vpop.f32.mrb[10].mxu0 }
 0x491   :  { %2182 = vst [vmem:[%s2934_s3 + $0x40] sm:$0xff] %v1257_v47  ;;  %v1255_v51 = vpop.f32.mrb[11].mxu0  ;;  %v1262_v53 = vpack.c.bf16 %v1257_v47, %v1257_v47 }
 0x492   :  { %2183 = vst [vmem:[%s2934_s3 + $0x48] sm:$0xff] %v1258_v49  ;;  %v1263_v52 = vpack.c.bf16 %v1258_v49, %v1258_v49 }
 0x494   :  { %1491 = vmatprep.mubr.bf16.mxu1 %v1263_v52 }
 0x495   :  { %1492 = vmatmul.mubr.bf16.vlgmr.msra.gmra.mrb[8].mxu1 %v1262_v53 }
 0x496   :  { %1946 = vmatpush1.bf16.msra.mxu1 %v2721_v2 }
 0x497   :  { %1947 = vmatprep.subr.bf16.mxu1 %v2725_v4 }
 0x49a   :  { %1948 = vmatpush1.bf16.msra.mxu1 %v2730_v5 }
 0x49b   :  { %1949 = vmatprep.subr.bf16.mxu1 %v2733_v6 }
 0x49e   :  { %1950 = vmatpush1.bf16.msra.mxu1 %v2736_v7 }
 0x49f   :  { %1951 = vmatprep.subr.bf16.mxu1 %v2739_v8 }
 0x4a2   :  { %1952 = vmatpush1.bf16.msra.mxu1 %v2742_v9 }
 0x4a3   :  { %1953 = vmatprep.subr.bf16.mxu1 %v2745_v10  ;;  %v2256_v10 = vld [vmem:[%s2931_s0 + $0x70] sm:$0xff] }
 0x4a6   :  { %1954 = vmatpush1.bf16.msra.mxu1 %v2748_v11  ;;  %v2257_v11 = vld [vmem:[%s2931_s0 + $0x78] sm:$0xff] }
 0x4a7   :  { %1955 = vmatprep.subr.bf16.mxu1 %v2751_v12 }
 0x4aa   :  { %1956 = vmatpush1.bf16.msra.mxu1 %v2754_v13 }
 0x4ab   :  { %1957 = vmatprep.subr.bf16.mxu1 %v2757_v14 }
 0x4ae   :  { %1958 = vmatpush1.bf16.msra.mxu1 %v2760_v15 }
 0x4af   :  { %1959 = vmatprep.subr.bf16.mxu1 %v2763_v16 }
 0x4b2   :  { %1960 = vmatpush1.bf16.msra.mxu1 %v2766_v17 }
 0x4b3   :  { %1961 = vmatprep.subr.bf16.mxu1 %v2769_v18 }
 0x4b6   :  { %1962 = vmatpush1.bf16.msra.mxu1 %v2772_v19 }
 0x4b7   :  { %1963 = vmatprep.subr.bf16.mxu1 %v2775_v20 }
 0x4ba   :  { %1964 = vmatpush1.bf16.msra.mxu1 %v2778_v21 }
 0x4bb   :  { %1965 = vmatprep.subr.bf16.mxu1 %v2781_v22 }
 0x4be   :  { %1966 = vmatpush1.bf16.msra.mxu1 %v2784_v23 }
 0x4bf   :  { %1967 = vmatprep.subr.bf16.mxu1 %v2787_v24 }
 0x4c2   :  { %1968 = vmatpush1.bf16.msra.mxu1 %v2790_v25 }
 0x4c3   :  { %1969 = vmatprep.subr.bf16.mxu1 %v2793_v26 }
 0x4c6   :  { %1970 = vmatpush1.bf16.msra.mxu1 %v2796_v27 }
 0x4c7   :  { %1971 = vmatprep.subr.bf16.mxu1 %v2799_v28 }
 0x4ca   :  { %1972 = vmatpush1.bf16.msra.mxu1 %v2802_v29 }
 0x4cb   :  { %1973 = vmatprep.subr.bf16.mxu1 %v2805_v30 }
 0x4ce   :  { %1974 = vmatpush1.bf16.msra.mxu1 %v2808_v31 }
 0x4cf   :  { %1975 = vmatprep.subr.bf16.mxu1 %v2395_v42 }
 0x4d2   :  { %1976 = vmatpush1.bf16.msra.mxu1 %v2393_v43 }
 0x568   :  { %v1493_v56 = vpop.f32.mrb[8].mxu1 }
 0x569   :  { %v1500_v57 = vadd.f32 %v2184_v54, %v1493_v56  ;;  %v1495_v58 = vpop.f32.mrb[9].mxu1 }
 0x56a   :  { %v1501_v59 = vadd.f32 %v2185_v55, %v1495_v58  ;;  %v1497_v60 = vpop.f32.mrb[10].mxu1 }
 0x56b   :  { %2218 = vst [vmem:[%s2934_s3 + $0x50] sm:$0xff] %v1500_v57  ;;  %v1498_v61 = vpop.f32.mrb[11].mxu1  ;;  %v1505_v63 = vpack.c.bf16 %v1500_v57, %v1500_v57 }
 0x56c   :  { %2219 = vst [vmem:[%s2934_s3 + $0x58] sm:$0xff] %v1501_v59  ;;  %v1506_v62 = vpack.c.bf16 %v1501_v59, %v1501_v59 }
 0x56e   :  { %1734 = vmatprep.mubr.bf16.mxu0 %v1506_v62 }
 0x56f   :  { %1735 = vmatmul.mubr.bf16.vlgmr.msra.gmra.mrb[12].mxu0 %v1505_v63 }
 0x642   :  { %v1736_v2 = vpop.f32.mrb[12].mxu0 }
 0x643   :  { %v1743_v3 = vadd.f32 %v2220_v0, %v1736_v2  ;;  %v1738_v4 = vpop.f32.mrb[13].mxu0 }
 0x644   :  { %v1744_v5 = vadd.f32 %v2221_v1, %v1738_v4  ;;  %v1740_v6 = vpop.f32.mrb[14].mxu0 }
 0x645   :  { %2254 = vst [vmem:[%s2934_s3 + $0x60] sm:$0xff] %v1743_v3  ;;  %v1741_v7 = vpop.f32.mrb[15].mxu0  ;;  %v1748_v9 = vpack.c.bf16 %v1743_v3, %v1743_v3 }
 0x646   :  { %2255 = vst [vmem:[%s2934_s3 + $0x68] sm:$0xff] %v1744_v5  ;;  %v1749_v8 = vpack.c.bf16 %v1744_v5, %v1744_v5 }
 0x648   :  { %1977 = vmatprep.mubr.bf16.mxu1 %v1749_v8 }
 0x649   :  { %1978 = vmatmul.mubr.bf16.vlgmr.msra.gmra.mrb[12].mxu1 %v1748_v9 }
 0x71c   :  { %v1979_v12 = vpop.f32.mrb[12].mxu1 }
 0x71d   :  { %v1986_v13 = vadd.f32 %v2256_v10, %v1979_v12  ;;  %v1981_v14 = vpop.f32.mrb[13].mxu1 }
 0x71e   :  { %v1987_v15 = vadd.f32 %v2257_v11, %v1981_v14  ;;  %v1983_v16 = vpop.f32.mrb[14].mxu1 }
 0x71f   :  { %2290 = vst [vmem:[%s2934_s3 + $0x70] sm:$0xff] %v1986_v13  ;;  %v1984_v17 = vpop.f32.mrb[15].mxu1 }
 0x720   :  { %2291 = vst [vmem:[%s2934_s3 + $0x78] sm:$0xff] %v1987_v15 }
 0x721   :  { %2004 = vsyncpa [#allocation4], 1 }

</bundles_post_ra>
